<compile_context>
chip_gen: v6e
topology: v6e:2x2x1
jax: 0.10.0
libtpu: 0.0.40
codegen_flags: <defaults>
</compile_context>

<pallas_src>
import functools

import jax
import jax.numpy as jnp
from jax import lax
from jax.experimental import pallas as pl
from jax.experimental.pallas import tpu as pltpu

C_OUT = 8          # GroupNorm(8, 8) forces an 8-channel merged encoding
GN_EPS = 1e-5      # nn.GroupNorm default eps


def _cdiv(a, b):
    return -(-a // b)


def _round_up(a, b):
    return _cdiv(a, b) * b


def _vmem_budget_bytes():
    """Generation-aware VMEM budget: ~80% of physical per-core VMEM."""
    try:
        cap = int(pltpu.get_tpu_info().vmem_capacity_bytes)
    except Exception:
        cap = 64 << 20   # conservative fallback (v7x per-TensorCore VMEM)
    return max(int(cap * 0.8), 16 << 20)


def _pick_hw_tile(hw, c_in, cap_lanes=None, target_tile_bytes=1 << 20):
    """Choose (hw_tile, n_tiles): hw_tile is a multiple of 128 sized so the
    (C_in, hw_tile) f32 input tile is ~target_tile_bytes; n_tiles*hw_tile >= hw
    with <~0.4% padding waste."""
    if cap_lanes is None:
        cap_lanes = (target_tile_bytes // (4 * c_in)) // 128 * 128
    cap_lanes = max(128, (cap_lanes // 128) * 128)
    hw_aligned = _round_up(hw, 128)
    if hw_aligned <= cap_lanes:
        return hw_aligned, 1
    n_tiles = _cdiv(hw, cap_lanes)
    hw_tile = _round_up(_cdiv(hw, n_tiles), 128)
    return hw_tile, n_tiles


def _sidetune_kernel(x_ref, w_ref, o_ref, sum_scr, sumsq_scr,
                     *, hw_tile, n_tiles, hw_total):
    # x_ref:     (C_in, hw_tile)   one HW tile of one sample (batch squeezed)
    # w_ref:     (C_OUT, C_in)     alpha-merged 1x1-conv weight (bias dropped:
    #                              it cancels under per-channel GroupNorm)
    # o_ref:     (C_OUT, HW_pad)   full per-sample output, resident across tiles
    # sum_scr:   (C_OUT, 1)        per-channel running sum      (VMEM scratch)
    # sumsq_scr: (C_OUT, 1)        per-channel running sum-of-squares
    t = pl.program_id(1)

    @pl.when(t == 0)
    def _init():
        sum_scr[...] = jnp.zeros_like(sum_scr)
        sumsq_scr[...] = jnp.zeros_like(sumsq_scr)

    # merged = W_m @ x : (C_OUT, C_in) @ (C_in, hw_tile) -> (C_OUT, hw_tile).
    # HW fills the lane/N axis of the MXU; stores are lane-dense.
    merged = jnp.dot(w_ref[...], x_ref[...], preferred_element_type=jnp.float32)

    # Per-channel running sums over the spatial axis (lane-axis reduce -> XLU).
    # Zero-padded pad columns contribute exactly 0 to both (no bias added).
    sum_scr[...] += jnp.sum(merged, axis=1, keepdims=True)
    sumsq_scr[...] += jnp.sum(merged * merged, axis=1, keepdims=True)

    # Write this tile into the resident per-sample output slab (unmasked,
    # 128-aligned lane offset).
    off = pl.multiple_of(t * hw_tile, 128)
    o_ref[:, pl.ds(off, hw_tile)] = merged.astype(o_ref.dtype)

    # Finalize: GroupNorm(8, 8, affine=False) -- one group per channel, stats
    # over the true spatial extent.  Chunked sweep over the resident slab so no
    # (C_OUT, HW)-sized temporaries are materialized.
    @pl.when(t == n_tiles - 1)
    def _finalize():
        inv_n = jnp.float32(1.0 / hw_total)
        mean = sum_scr[...] * inv_n                               # (C_OUT, 1)
        var = jnp.maximum(sumsq_scr[...] * inv_n - mean * mean, 0.0)
        inv_std = lax.rsqrt(var + jnp.float32(GN_EPS))            # EUP
        scale = inv_std                                           # (C_OUT, 1)
        shift = mean * inv_std                                    # (C_OUT, 1)

        @pl.loop(0, n_tiles)
        def _(i):
            o = pl.multiple_of(i * hw_tile, 128)
            chunk = o_ref[:, pl.ds(o, hw_tile)].astype(jnp.float32)
            o_ref[:, pl.ds(o, hw_tile)] = (chunk * scale - shift).astype(o_ref.dtype)


@functools.partial(jax.jit, static_argnames=("hw_tile_cap", "out_dtype"))
def sidetune_forward(x_nchw, w_base, b_base, w_side, b_side, alpha,
                     *, hw_tile_cap=None, out_dtype=jnp.float32):
    """x_nchw: (B, C_in, H, W) float32. Returns (B, 8, H, W) in out_dtype.

    b_base / b_side are accepted for interface fidelity but never reach the
    kernel: the alpha-folded bias is a per-channel constant, which the
    per-channel, affine=False GroupNorm subtracts exactly (valid only for this
    config).  out_dtype=bf16 cuts output HBM traffic ~33% on v6e/v7x (stats and
    matmul accumulation stay f32).
    """
    del b_base, b_side
    B, C_in, H, W = x_nchw.shape
    HW = H * W

    # NCHW -> (B, C_in, HW): pure reshape of the contiguous layout (free),
    # keeping the long spatial axis on the lanes.
    x = x_nchw.reshape(B, C_in, HW).astype(jnp.float32)

    # Fold the alpha blend into the weights (blend is linear => exact):
    #   a*(Wb x) + (1-a)*(Ws x) = (a*Wb + (1-a)*Ws) x
    a = jax.nn.sigmoid(jnp.asarray(alpha, jnp.float32))
    w_m = (a * w_base + (1.0 - a) * w_side).astype(jnp.float32).T   # (C_OUT, C_in)

    # Byte-sized HW tiling; pad HW up to n_tiles * hw_tile with zeros (pad
    # columns are exact zeros after the bias-free matmul, so stats stay exact).
    hw_tile, n_tiles = _pick_hw_tile(HW, C_in, cap_lanes=hw_tile_cap)
    hw_pad = hw_tile * n_tiles
    if hw_pad != HW:
        x = jnp.pad(x, ((0, 0), (0, 0), (0, hw_pad - HW)))

    # Generation-aware VMEM budgeting.
    budget = _vmem_budget_bytes()
    out_itemsize = jnp.dtype(out_dtype).itemsize
    out_slab = C_OUT * hw_pad * out_itemsize
    x_bufs = 2 * C_in * hw_tile * 4
    fixed = 2 << 20                          # weights, scratch, headroom
    out_buffers = 2
    if x_bufs + 2 * out_slab + fixed > budget:
        out_buffers = 1                      # single-buffer the resident slab

    out_spec_kwargs = {}
    if out_buffers == 1:
        out_spec_kwargs["pipeline_mode"] = pl.Buffered(1)
    out_spec = pl.BlockSpec((None, C_OUT, hw_pad), lambda b, t: (b, 0, 0),
                            **out_spec_kwargs)

    kernel = functools.partial(_sidetune_kernel, hw_tile=hw_tile,
                               n_tiles=n_tiles, hw_total=HW)

    out = pl.pallas_call(
        kernel,
        out_shape=jax.ShapeDtypeStruct((B, C_OUT, hw_pad), out_dtype),
        grid_spec=pltpu.PrefetchScalarGridSpec(
            num_scalar_prefetch=0,
            grid=(B, n_tiles),
            in_specs=[
                pl.BlockSpec((None, C_in, hw_tile), lambda b, t: (b, 0, t)),  # x tile
                pl.BlockSpec((C_OUT, C_in), lambda b, t: (0, 0)),             # merged W
            ],
            out_specs=out_spec,
            scratch_shapes=[pltpu.VMEM((C_OUT, 1), jnp.float32),
                            pltpu.VMEM((C_OUT, 1), jnp.float32)],
        ),
        compiler_params=pltpu.CompilerParams(
            dimension_semantics=("parallel", "arbitrary"),
            vmem_limit_bytes=budget,
        ),
    )(x, w_m)

    # Drop the spatial padding (free-ish slice in the wrapper) and restore NCHW.
    if hw_pad != HW:
        out = out[:, :, :HW]
    return out.reshape(B, C_OUT, H, W)


def _reference(x_nchw, w_base, b_base, w_side, b_side, alpha):
    """Pure-JAX reference of the same forward pass (biases included)."""
    B, C_in, H, W = x_nchw.shape
    x = jnp.transpose(x_nchw, (0, 2, 3, 1)).reshape(B, H * W, C_in)
    base = x @ w_base + b_base
    side = x @ w_side + b_side
    a = jax.nn.sigmoid(alpha)
    merged = a * base + (1.0 - a) * side                        # (B, HW, 8)
    mean = merged.mean(axis=1, keepdims=True)
    var = ((merged - mean) ** 2).mean(axis=1, keepdims=True)
    normed = (merged - mean) * lax.rsqrt(var + GN_EPS)
    return jnp.transpose(normed.reshape(B, H, W, C_OUT), (0, 3, 1, 2))


if __name__ == "__main__":
    key = jax.random.PRNGKey(0)
    kx, kwb, kbb, kws, kbs, kx2 = jax.random.split(key, 6)

    # --- Case 1: aligned HW, forced multi-tile path (HW=256 -> 2 tiles of 128)
    B, C_in, H, W = 2, 4, 16, 16
    x = jax.random.normal(kx, (B, C_in, H, W), dtype=jnp.float32)
    w_base = 0.1 * jax.random.normal(kwb, (C_in, C_OUT), dtype=jnp.float32)
    b_base = 0.1 * jax.random.normal(kbb, (1, C_OUT), dtype=jnp.float32)
    w_side = 0.1 * jax.random.normal(kws, (C_in, C_OUT), dtype=jnp.float32)
    b_side = 0.1 * jax.random.normal(kbs, (1, C_OUT), dtype=jnp.float32)
    alpha = jnp.float32(0.0)   # alpha_kwargs default init_value=0.0

    out = sidetune_forward(x, w_base, b_base, w_side, b_side, alpha,
                           hw_tile_cap=128)
    out = jax.block_until_ready(out)
    ref = _reference(x, w_base, b_base, w_side, b_side, alpha)
    assert out.shape == (B, C_OUT, H, W)
    assert jnp.allclose(out, ref, atol=1e-4, rtol=1e-4), "case1 mismatch"

    # --- Case 2: unaligned HW (400 -> padded to 4 tiles of 128) exercising the
    # zero-pad path with pad columns excluded from the GroupNorm statistics.
    B2, C2, H2, W2 = 1, 3, 20, 20
    x2 = jax.random.normal(kx2, (B2, C2, H2, W2), dtype=jnp.float32)
    w_base2 = w_base[:C2]
    w_side2 = w_side[:C2]
    alpha2 = jnp.float32(0.3)
    out2 = sidetune_forward(x2, w_base2, b_base, w_side2, b_side, alpha2,
                            hw_tile_cap=128)
    out2 = jax.block_until_ready(out2)
    ref2 = _reference(x2, w_base2, b_base, w_side2, b_side, alpha2)
    assert out2.shape == (B2, C_OUT, H2, W2)
    assert jnp.allclose(out2, ref2, atol=1e-4, rtol=1e-4), "case2 mismatch"

    print("KERNEL_OK")
</pallas_src>

<mosaic_0001>
module attributes {stable_mosaic.version = 11 : i64} {
  func.func @_sidetune_kernel(%arg0: i32, %arg1: i32, %arg2: memref<1x4x128xf32, #tpu.memory_space<vmem>>, %arg3: memref<8x4xf32, #tpu.memory_space<vmem>>, %arg4: memref<1x8x256xf32, #tpu.memory_space<vmem>>, %arg5: memref<8x1xf32, #tpu.memory_space<vmem>>, %arg6: memref<8x1xf32, #tpu.memory_space<vmem>>) attributes {dimension_semantics = [#tpu.dimension_semantics<parallel>, #tpu.dimension_semantics<arbitrary>], iteration_bounds = array<i64: 2, 2>, scalar_prefetch = 0 : i64, scratch_operands = 2 : i64, tpu.core_type = #tpu.core_type<tc>, window_params = [{transform_indices = @transform_0, window_bounds = array<i64: 1, 4, 128>}, {pipeline_mode = #tpu.pipeline_mode<synchronous>, transform_indices = @transform_1, window_bounds = array<i64: 8, 4>}, {transform_indices = @transform_2, window_bounds = array<i64: 1, 8, 256>}]} {
    %c0_i32 = arith.constant 0 : i32
    %0 = arith.cmpi eq, %arg1, %c0_i32 : i32
    %1 = arith.extui %0 : i1 to i32
    %c0_i32_0 = arith.constant 0 : i32
    %2 = arith.cmpi ne, %1, %c0_i32_0 : i32
    scf.if %2 {
      %cst_18 = arith.constant 0.000000e+00 : f32
      %27 = vector.broadcast %cst_18 : f32 to vector<8x1xf32>
      %c0_19 = arith.constant 0 : index
      %c0_20 = arith.constant 0 : index
      %28 = vector.load %arg5[%c0_19, %c0_20] : memref<8x1xf32, #tpu.memory_space<vmem>>, vector<8x1xf32>
      tpu.vector_store %arg5[%c0_19, %c0_20], %27 {strides = array<i32>} : memref<8x1xf32, #tpu.memory_space<vmem>>, vector<8x1xf32>,
      %cst_21 = arith.constant 0.000000e+00 : f32
      %29 = vector.broadcast %cst_21 : f32 to vector<8x1xf32>
      %c0_22 = arith.constant 0 : index
      %c0_23 = arith.constant 0 : index
      %30 = vector.load %arg6[%c0_22, %c0_23] : memref<8x1xf32, #tpu.memory_space<vmem>>, vector<8x1xf32>
      tpu.vector_store %arg6[%c0_22, %c0_23], %29 {strides = array<i32>} : memref<8x1xf32, #tpu.memory_space<vmem>>, vector<8x1xf32>,
    } else {
    }
    %c0 = arith.constant 0 : index
    %c0_1 = arith.constant 0 : index
    %3 = vector.load %arg3[%c0, %c0_1] : memref<8x4xf32, #tpu.memory_space<vmem>>, vector<8x4xf32>
    %c0_2 = arith.constant 0 : index
    %c0_3 = arith.constant 0 : index
    %c0_4 = arith.constant 0 : index
    %4 = vector.load %arg2[%c0_2, %c0_3, %c0_4] : memref<1x4x128xf32, #tpu.memory_space<vmem>>, vector<1x4x128xf32>
    %5 = vector.shape_cast %4 : vector<1x4x128xf32> to vector<4x128xf32>
    %cst = arith.constant dense<0.000000e+00> : vector<8x128xf32>
    %6 = tpu.matmul %3, %5, %cst {dimension_numbers = #tpu.dot_dimension_numbers<[1], [0], [0], [1], [0, 0, 1, 1], [], []>} : vector<8x4xf32>, vector<4x128xf32>, vector<8x128xf32> -> vector<8x128xf32>
    %c0_5 = arith.constant 0 : index
    %c0_6 = arith.constant 0 : index
    %7 = vector.load %arg5[%c0_5, %c0_6] : memref<8x1xf32, #tpu.memory_space<vmem>>, vector<8x1xf32>
    %cst_7 = arith.constant dense<0.000000e+00> : vector<8xf32>
    %8 = vector.multi_reduction <add>, %6, %cst_7 [1] : vector<8x128xf32> to vector<8xf32>
    %9 = vector.shape_cast %8 : vector<8xf32> to vector<8x1xf32>
    %10 = arith.addf %7, %9 : vector<8x1xf32>
    %c0_8 = arith.constant 0 : index
    %c0_9 = arith.constant 0 : index
    %11 = vector.load %arg5[%c0_8, %c0_9] : memref<8x1xf32, #tpu.memory_space<vmem>>, vector<8x1xf32>
    tpu.vector_store %arg5[%c0_8, %c0_9], %10 {strides = array<i32>} : memref<8x1xf32, #tpu.memory_space<vmem>>, vector<8x1xf32>,
    %c0_10 = arith.constant 0 : index
    %c0_11 = arith.constant 0 : index
    %12 = vector.load %arg6[%c0_10, %c0_11] : memref<8x1xf32, #tpu.memory_space<vmem>>, vector<8x1xf32>
    %13 = arith.mulf %6, %6 : vector<8x128xf32>
    %cst_12 = arith.constant dense<0.000000e+00> : vector<8xf32>
    %14 = vector.multi_reduction <add>, %13, %cst_12 [1] : vector<8x128xf32> to vector<8xf32>
    %15 = vector.shape_cast %14 : vector<8xf32> to vector<8x1xf32>
    %16 = arith.addf %12, %15 : vector<8x1xf32>
    %c0_13 = arith.constant 0 : index
    %c0_14 = arith.constant 0 : index
    %17 = vector.load %arg6[%c0_13, %c0_14] : memref<8x1xf32, #tpu.memory_space<vmem>>, vector<8x1xf32>
    tpu.vector_store %arg6[%c0_13, %c0_14], %16 {strides = array<i32>} : memref<8x1xf32, #tpu.memory_space<vmem>>, vector<8x1xf32>,
    %c128_i32 = arith.constant 128 : i32
    %18 = arith.muli %arg1, %c128_i32 : i32
    %19 = tpu.assume_multiple %18, 128 : i32
    %c0_15 = arith.constant 0 : index
    %c0_16 = arith.constant 0 : index
    %20 = arith.index_cast %19 : i32 to index
    %21 = vector.load %arg4[%c0_15, %c0_16, %20] : memref<1x8x256xf32, #tpu.memory_space<vmem>>, vector<1x8x128xf32>
    %22 = vector.shape_cast %21 : vector<1x8x128xf32> to vector<8x128xf32>
    %23 = vector.shape_cast %6 : vector<8x128xf32> to vector<1x8x128xf32>
    tpu.vector_store %arg4[%c0_15, %c0_16, %20], %23 {strides = array<i32>} : memref<1x8x256xf32, #tpu.memory_space<vmem>>, vector<1x8x128xf32>,
    %c1_i32 = arith.constant 1 : i32
    %24 = arith.cmpi eq, %arg1, %c1_i32 : i32
    %25 = arith.extui %24 : i1 to i32
    %c0_i32_17 = arith.constant 0 : i32
    %26 = arith.cmpi ne, %25, %c0_i32_17 : i32
    scf.if %26 {
      %c0_18 = arith.constant 0 : index
      %c0_19 = arith.constant 0 : index
      %27 = vector.load %arg5[%c0_18, %c0_19] : memref<8x1xf32, #tpu.memory_space<vmem>>, vector<8x1xf32>
      %cst_20 = arith.constant 3.906250e-03 : f32
      %28 = vector.broadcast %cst_20 : f32 to vector<8x1xf32>
      %29 = arith.mulf %27, %28 : vector<8x1xf32>
      %c0_21 = arith.constant 0 : index
      %c0_22 = arith.constant 0 : index
      %30 = vector.load %arg6[%c0_21, %c0_22] : memref<8x1xf32, #tpu.memory_space<vmem>>, vector<8x1xf32>
      %cst_23 = arith.constant 3.906250e-03 : f32
      %31 = vector.broadcast %cst_23 : f32 to vector<8x1xf32>
      %32 = arith.mulf %30, %31 : vector<8x1xf32>
      %33 = arith.mulf %29, %29 : vector<8x1xf32>
      %34 = arith.subf %32, %33 : vector<8x1xf32>
      %cst_24 = arith.constant 0.000000e+00 : f32
      %35 = vector.broadcast %cst_24 : f32 to vector<8x1xf32>
      %36 = arith.maximumf %34, %35 : vector<8x1xf32>
      %cst_25 = arith.constant 9.99999974E-6 : f32
      %37 = vector.broadcast %cst_25 : f32 to vector<8x1xf32>
      %38 = arith.addf %36, %37 : vector<8x1xf32>
      %39 = math.rsqrt %38 : vector<8x1xf32>
      %40 = arith.mulf %29, %39 : vector<8x1xf32>
      %c0_i32_26 = arith.constant 0 : i32
      %c2_i32 = arith.constant 2 : i32
      %41 = arith.addi %c0_i32_26, %c2_i32 : i32
      %c1_i32_27 = arith.constant 1 : i32
      scf.for %arg7 = %c0_i32_26 to %41 step %c1_i32_27  : i32 {
        %c1_i32_29 = arith.constant 1 : i32
        %42 = arith.muli %arg7, %c1_i32_29 : i32
        %c0_i32_30 = arith.constant 0 : i32
        %43 = arith.addi %c0_i32_30, %42 : i32
        %c128_i32_31 = arith.constant 128 : i32
        %44 = arith.muli %43, %c128_i32_31 : i32
        %45 = tpu.assume_multiple %44, 128 : i32
        %c0_32 = arith.constant 0 : index
        %c0_33 = arith.constant 0 : index
        %46 = arith.index_cast %45 : i32 to index
        %47 = vector.load %arg4[%c0_32, %c0_33, %46] : memref<1x8x256xf32, #tpu.memory_space<vmem>>, vector<1x8x128xf32>
        %48 = vector.shape_cast %47 : vector<1x8x128xf32> to vector<8x128xf32>
        %49 = vector.broadcast %39 : vector<8x1xf32> to vector<8x128xf32>
        %50 = arith.mulf %48, %49 : vector<8x128xf32>
        %51 = vector.broadcast %40 : vector<8x1xf32> to vector<8x128xf32>
        %52 = arith.subf %50, %51 : vector<8x128xf32>
        %c0_34 = arith.constant 0 : index
        %c0_35 = arith.constant 0 : index
        %53 = arith.index_cast %45 : i32 to index
        %54 = vector.load %arg4[%c0_34, %c0_35, %53] : memref<1x8x256xf32, #tpu.memory_space<vmem>>, vector<1x8x128xf32>
        %55 = vector.shape_cast %54 : vector<1x8x128xf32> to vector<8x128xf32>
        %56 = vector.shape_cast %52 : vector<8x128xf32> to vector<1x8x128xf32>
        tpu.vector_store %arg4[%c0_34, %c0_35, %53], %56 {strides = array<i32>} : memref<1x8x256xf32, #tpu.memory_space<vmem>>, vector<1x8x128xf32>,
      }
      %c2_i32_28 = arith.constant 2 : i32
    } else {
    }
    return
  }
  func.func @transform_0(%arg0: i32, %arg1: i32) -> (i32, i32, i32) {
    %c0_i32 = arith.constant 0 : i32
    %c0_i32_0 = arith.constant 0 : i32
    return %arg0, %c0_i32, %arg1 : i32, i32, i32
  }
  func.func @transform_1(%arg0: i32, %arg1: i32) -> (i32, i32) {
    %c0_i32 = arith.constant 0 : i32
    %c0_i32_0 = arith.constant 0 : i32
    %c0_i32_1 = arith.constant 0 : i32
    return %c0_i32, %c0_i32_0 : i32, i32
  }
  func.func @transform_2(%arg0: i32, %arg1: i32) -> (i32, i32, i32) {
    %c0_i32 = arith.constant 0 : i32
    %c0_i32_0 = arith.constant 0 : i32
    %c0_i32_1 = arith.constant 0 : i32
    return %arg0, %c0_i32, %c0_i32_0 : i32, i32, i32
  }
}

</mosaic_0001>

<bundles_post_ra>
// kernel: sidetune_forward.1
= control target key start
LH: loop header
LB: loop body
LE: loop exit
PB: predicated region body
PF: predicated region fallthrough
CT: control target
= control target key end

     0   :  { %s541_s9 = smov 0   ;;  %s543_s10 = smov 0   ;;  %s606_s0 = inlined_call_operand.vmem [shape: f32[2,4,256], index: 0, kind: input, shape index: {}]   ;;  %s607_s1 = inlined_call_operand.vmem [shape: f32[8,4], index: 1, kind: input, shape index: {}]   ;;  %s608_s2 = inlined_call_operand.vmem [shape: f32[2,8,256], index: 2, kind: output, shape index: {}]  }
   0x1   :  { %s545_s11 = smov 0   ;;  %s547_s12 = smov 0  }
   0x2   :  { %s549_s13 = smov 0  }
   0x3 LB: > { %s21_s14 = sadd.s32 1, %s508_s11  ;;  %s24_s15 = sadd.s32 1, %s512_s12  ;;  %s516_s13 = sphi %s549_s13, %s12_s13   ;;  %s512_s12 = sphi %s547_s12, %s612_s12   ;;  %s508_s11 = sphi %s545_s11, %s611_s11   ;;  %s504_s10 = sphi %s543_s10, %s610_s10   ;;  %s500_s9 = sphi %s541_s9, %s609_s9  }
   0x4   : > { %p22_p0 = scmp.ge.s32.totalorder %s21_s14, 2  ;;  %p396_p1 = scmp.ge.s32.totalorder %s516_s13, 1 }
   0x5   : > { %p129_p2 = scmp.lt.s32.totalorder %s516_s13, 5 }
   0x6   : > { %s614_s14 = smov (%p22_p0, %s21_s14), 0  ;;  %s616_s15 = smov (!%p22_p0, %s24_s15), %s512_s12 }
   0x7   : > { %p130_p3 = pnand %p396_p1, %p129_p2  ;;  %p26_p4 = scmp.ge.s32.totalorder %s616_s15, 2 }
   0x8   : > { %p154_p5 = scmp.lt.s32.totalorder (!%p130_p3), %s504_s10, 1  ;;  %p156_p6 = scmp.lt.s32.totalorder (!%p130_p3), %s500_s9, 1 }
   0x9   : > { %s618_s15 = smov (%p26_p4, %s616_s15), 0  ;;  %133 = sbr.rel (%p130_p3) target bundleno = 529 (0x211), region = 28 }
   0xa   : > { %p401_p7 = scmp.ne.s32.totalorder (!%p130_p3), %s500_s9, 0 }
   0xe   : > { %s620_s10 = smov (!%p154_p5, %s504_s10), 1 }
   0xf   : > { %s157_s16 = scalar_select %p156_p6, %s500_s9, 1 }
  0x10   : > { %s397_s17 = sshll.u32 %s620_s10, 1  ;;  %s411_s18 = sshll.u32 %s620_s10, 4 }
  0x11   : > { %s159_s19 = sadd.s32 %s397_s17, %s157_s16  ;;  %s578_s22 = scalar_lea.vmem %s608_s2, %s411_s18 }
  0x12   : > { %s398_s23 = sshll.u32 %s159_s19, 2  ;;  %170 = sbr.rel (%p401_p7) target bundleno = 25 (0x19), region = 32 }
  0x13   : > { %s161_s26 = scalar_lea.vmem %s606_s0, %s398_s23 }
  0x17   : > { %vm171_vm0 = vcmask 7168   ;;  %v522_v0 = vmov 0.0  }
  0x18   : > { %172 = vst.msk [vmem:[#allocation2] sm:$0xff] %vm171_vm0, %v522_v0  ;;  %173 = vst.msk [vmem:[#allocation3] sm:$0xff] %vm171_vm0, %v522_v0 }
  0x19 PF: > { %v175_v1 = vld [vmem:[%s161_s26] sm:$0xf]  ;;  %vm180_vm1 = vcmask 1043456   ;;  %v523_v3 = vmov 0.0   ;;  %vm524_vm2 = vmmov 0   ;;  %vm176_vm3 = vcmask 31744  }
  0x1a   : > { %v174_v2 = vld [vmem:[%s607_s1] sm:$0xff]  ;;  %414 = vmatprep.subr.mxu0 %v523_v3  ;;  %416 = vmatprep.mubr.msk.f32.mxu0 %vm524_vm2, %v523_v3  ;;  %s404_s29 = sshll.u32 %s500_s9, 7  ;;  %vm258_vm4 = vcmask 7168   ;;  %p406_p8 = scmp.ne.s32.totalorder %s500_s9, 1 }
  0x1b   : > { %415 = vmatpush3.msk.msra.mxu0 %vm180_vm1, %v175_v1  ;;  %s267_s30 = sshra.s32 %s404_s29, 7  ;;  %s518_s5 = smov (!%p406_p8), 0  }
  0x1c   : > { %417 = vmatmul.mubr.msk.f32.vlgmr.msra.gmra.mxu0 %vm176_vm3, %v174_v2  ;;  %s405_s3 = sshll.u32 %s267_s30, 3 }
  0x1d   : > { %s270_s4 = scalar_lea.vmem %s578_s22, %s405_s3 }
  0x1f   : > { %v254_v7 = vld [vmem:[#allocation2] sm:$0xff]  ;;  %v260_v10 = vld [vmem:[#allocation3] sm:$0xff] }
  0xdc   : > { %v250_v4 = vpop.f32.mrf.mxu0 }
  0xdd   : > { %271 = vst [vmem:[%s270_s4] sm:$0xff] %v250_v4  ;;  %255 = vadd.xlane.f32.xlu0 %v250_v4  ;;  %v261_v6 = vmul.f32 %v250_v4, %v250_v4 }
  0xde   : > { %v418_v5 = vpop.f32.mrf.mxu0 }
  0xe1   : > { %262 = vadd.xlane.f32.xlu0 %v261_v6 }
 0x166   : > { %v256_v8 = vpop.xlane.xlu0 %255 }
 0x167   : > { %v257_v9 = vadd.f32 %v256_v8, %v254_v7 }
 0x169   : > { %259 = vst.msk [vmem:[#allocation2] sm:$0xff] %vm258_vm4, %v257_v9  ;;  %275 = sbr.rel (%p406_p8) target bundleno = 529 (0x211), region = 36 }
 0x16a   : > { %v263_v11 = vpop.xlane.xlu0 %262 }
 0x16b   : > { %v264_v12 = vadd.f32 %v263_v11, %v260_v10 }
 0x16d   : > { %265 = vst.msk [vmem:[#allocation3] sm:$0xff] %vm258_vm4, %v264_v12 }
 0x170   : > { %v276_v13 = vld [vmem:[#allocation2] sm:$0xff] }
 0x171   : > { %v277_v15 = vmul.f32 0.00390625, %v276_v13 }
 0x173   : > { %v280_v17 = vmul.f32 %v277_v15, %v277_v15 }
 0x174   : > { %v278_v14 = vld [vmem:[#allocation3] sm:$0xff] }
 0x175   : > { %v279_v16 = vmul.f32 0.00390625, %v278_v14 }
 0x177   : > { %v281_v18 = vsub.f32 %v279_v16, %v280_v17 }
 0x179   : > { %v282_v19 = vmax.f32 %v281_v18, 0.0 }
 0x17b   : > { %v283_v20 = vadd.f32 1e-05, %v282_v19 }
 0x17d   : > { %471 = vrsqrt.f32 %v283_v20 }
 0x18a   : > { %v472_v21 = vpop.eup %471 }
 0x18b   : > { %v285_v22 = vmul.f32 %v472_v21, %v277_v15 }
 0x18c LB: >> { %v525_v23 = vmov 0   ;;  %s407_s6 = sshll.u32 %s520_s5, 7  ;;  %s291_s5 = sadd.s32 1, %s520_s5   ;;  %s520_s5 = sphi %s518_s5, %s291_s5  }
 0x18d   : >> { %473 = vset.pattern.permute.xlu0 %v525_v23  ;;  %s293_s7 = sshra.s32 %s407_s6, 7  ;;  %p288_p9 = scmp.ge.s32.totalorder %s291_s5, 2  }
 0x18e   : >> { %300 = vperm.xlu0 %473, %v472_v21   ;;  %s408_s8 = sshll.u32 %s293_s7, 3 }
 0x18f   : >> { %s296_s9 = scalar_lea.vmem %s578_s22, %s408_s8 }
 0x190   : >> { %v297_v25 = vld [vmem:[%s296_s9] sm:$0xff] }
 0x192   : >> { %306 = vperm.xlu0 %473, %v285_v22  }
 0x209   : >> { %v301_v24 = vpop.permute.xlu0 %300 }
 0x20a   : >> { %v303_v26 = vmul.f32 %v301_v24, %v297_v25 }
 0x20c   : > { %290 = sbr.rel (!%p288_p9) target bundleno = 396 (0x18c), region = 75 }
 0x20d   : >> { %v307_v27 = vpop.permute.xlu0 %306 }
 0x20e   : >> { %v309_v28 = vsub.f32 %v303_v26, %v307_v27 }
 0x210   : >> { %310 = vst [vmem:[%s296_s9] sm:$0xff] %v309_v28 }
 0x211 PF: > { %s12_s13 = sadd.s32 1, %s516_s13   ;;  %s609_s9 = smov %s508_s11 }
 0x212   : > { %p9_p10 = scmp.ge.s32.totalorder %s12_s13, 6   ;;  %s610_s10 = smov %s512_s12 }
 0x213   : > { %s611_s11 = smov %s614_s14  ;;  %s612_s12 = smov %s618_s15 }
 0x214   :  { %11 = sbr.rel (!%p9_p10) target bundleno = 3 (0x3), region = 86 }

</bundles_post_ra>
